<compile_context>
chip_gen: v5e
topology: v5e:2x2
jax: 0.10.0
libtpu: 0.0.40
codegen_flags: <defaults>
</compile_context>

<pallas_src>
import functools

import jax
import jax.numpy as jnp
from jax import lax
from jax.experimental import pallas as pl
from jax.experimental.pallas import tpu as pltpu


# --------------------------------------------------------------------------
# kernels
# --------------------------------------------------------------------------
def _gram_partial(feat_ref):
    """feats @ feats.T for the current K block (f32 MXU accumulate)."""
    f = feat_ref[...]
    return lax.dot_general(
        f, f,
        dimension_numbers=(((1,), (1,)), ((), ())),
        preferred_element_type=jnp.float32,
    )


def _gram_kernel(feat_ref, g_ref, *, inv_norm):
    """Accumulate the gram matrix directly in the (VMEM-resident) output."""
    k = pl.program_id(0)

    @pl.when(k == 0)
    def _():
        g_ref[...] = jnp.zeros_like(g_ref)

    g_ref[...] += _gram_partial(feat_ref)

    @pl.when(k == pl.num_programs(0) - 1)
    def _():
        g_ref[...] = g_ref[...] * inv_norm


def _style_loss_kernel(feat_ref, tgt_ref, loss_ref, acc_ref, *, inv_norm, inv_mm):
    """Gram in VMEM scratch; emit only the scalar MSE vs the target gram."""
    k = pl.program_id(0)

    @pl.when(k == 0)
    def _():
        acc_ref[...] = jnp.zeros_like(acc_ref)

    acc_ref[...] += _gram_partial(feat_ref)

    @pl.when(k == pl.num_programs(0) - 1)
    def _():
        diff = acc_ref[...] * inv_norm - tgt_ref[...]
        loss_ref[0, 0] = jnp.sum(diff * diff) * inv_mm


# --------------------------------------------------------------------------
# wrappers
# --------------------------------------------------------------------------
def _pick_tile_k(M, K, max_tk=2048, vmem_budget_bytes=8 << 20):
    """Largest K tile that divides K, is 128-aligned, and keeps the
    double-buffered (M, tk) feature blocks under a conservative VMEM budget
    (fits the v5e 16 MiB / v7x 32 MiB default scoped limits with headroom)."""
    cap = (vmem_budget_bytes // (2 * max(M, 1) * 4)) // 128 * 128
    cap = max(128, min(max_tk, cap))
    if K <= cap:
        return K
    tk = cap
    while tk >= 128:
        if K % tk == 0:
            return tk
        tk -= 128
    return K  # no 128-aligned divisor: fall back to a single full-K block


def _as_features(x):
    d0, d1, d2, d3 = x.shape
    f = x.reshape(d0 * d1, d2 * d3)
    # Feed bf16 straight to the MXU (f32 accumulate); cast anything else to f32.
    if f.dtype not in (jnp.float32, jnp.bfloat16):
        f = f.astype(jnp.float32)
    return f, d0 * d1 * d2 * d3


def gram_matrix_pallas(features, norm, tile_k=None):
    """features: (M, K) -> normalized gram matrix (M, M) f32."""
    M, K = features.shape
    tk = _pick_tile_k(M, K) if tile_k is None else tile_k
    kernel = functools.partial(_gram_kernel, inv_norm=1.0 / float(norm))
    return pl.pallas_call(
        kernel,
        out_shape=jax.ShapeDtypeStruct((M, M), jnp.float32),
        grid=(K // tk,),
        in_specs=[pl.BlockSpec((M, tk), lambda k: (0, k))],
        out_specs=pl.BlockSpec((M, M), lambda k: (0, 0)),
        compiler_params=pltpu.CompilerParams(
            dimension_semantics=("arbitrary",)),
        cost_estimate=pl.CostEstimate(
            flops=2 * M * M * K,
            transcendentals=0,
            bytes_accessed=M * K * features.dtype.itemsize + M * M * 4),
    )(features)


def style_loss_pallas(features, target_gram, norm, tile_k=None):
    """features: (M, K), target_gram: (M, M) f32 -> scalar MSE loss.
    The gram matrix stays in VMEM scratch; only a (1,1) SMEM scalar leaves."""
    M, K = features.shape
    tk = _pick_tile_k(M, K) if tile_k is None else tile_k
    kernel = functools.partial(
        _style_loss_kernel,
        inv_norm=1.0 / float(norm),
        inv_mm=1.0 / float(M * M),
    )
    loss = pl.pallas_call(
        kernel,
        out_shape=jax.ShapeDtypeStruct((1, 1), jnp.float32),
        grid=(K // tk,),
        in_specs=[
            pl.BlockSpec((M, tk), lambda k: (0, k)),
            pl.BlockSpec((M, M), lambda k: (0, 0)),  # constant block: fetched once
        ],
        out_specs=pl.BlockSpec((1, 1), lambda k: (0, 0),
                               memory_space=pltpu.MemorySpace.SMEM),
        scratch_shapes=[pltpu.VMEM((M, M), jnp.float32)],
        compiler_params=pltpu.CompilerParams(
            dimension_semantics=("arbitrary",)),
        cost_estimate=pl.CostEstimate(
            flops=2 * M * M * K,
            transcendentals=0,
            bytes_accessed=M * K * features.dtype.itemsize + M * M * 4 + 4),
    )(features, target_gram)
    return loss[0, 0]


class StyleLoss:
    """JAX/Pallas port of the PyTorch StyleLoss module (forward only)."""

    def __init__(self, target_feature):
        feats, norm = _as_features(target_feature)
        self.target = gram_matrix_pallas(feats, norm)  # detached constant
        # mse(target, target) == 0; no second kernel launch needed.
        self.loss = jnp.float32(0.0)

    def forward(self, x):
        feats, norm = _as_features(x)
        self.loss = style_loss_pallas(feats, self.target, norm)
        return x  # pass-through, exactly like the PyTorch module

    __call__ = forward


# --------------------------------------------------------------------------
# reference + self-test
# --------------------------------------------------------------------------
def _gram_ref(x):
    d0, d1, d2, d3 = x.shape
    f = x.reshape(d0 * d1, d2 * d3).astype(jnp.float32)
    return (f @ f.T) / float(d0 * d1 * d2 * d3)


if __name__ == "__main__":
    key = jax.random.PRNGKey(0)
    k_tgt, k_in = jax.random.split(key)
    # NCHW-style feature map (2, 4, 16, 16) -> features (8, 256), gram (8, 8)
    shape = (2, 4, 16, 16)
    target_feature = jax.random.normal(k_tgt, shape, dtype=jnp.float32)
    x = jax.random.normal(k_in, shape, dtype=jnp.float32)

    module = StyleLoss(target_feature)
    out = jax.block_until_ready(module(x))
    loss = jax.block_until_ready(module.loss)

    G_ref = _gram_ref(x)
    T_ref = _gram_ref(target_feature)
    loss_ref = jnp.mean((G_ref - T_ref) ** 2)

    assert out.shape == x.shape
    assert jnp.allclose(out, x)
    assert jnp.allclose(module.target, T_ref, atol=1e-5, rtol=1e-5)
    assert jnp.allclose(loss, loss_ref, atol=1e-5, rtol=1e-5)

    # Also exercise the multi-step K-reduction path (K=256 -> two 128-wide tiles).
    feats, norm = _as_features(x)
    loss_tiled = jax.block_until_ready(
        style_loss_pallas(feats, module.target, norm, tile_k=128))
    gram_tiled = jax.block_until_ready(
        gram_matrix_pallas(feats, norm, tile_k=128))
    assert jnp.allclose(loss_tiled, loss_ref, atol=1e-5, rtol=1e-5)
    assert jnp.allclose(gram_tiled, G_ref, atol=1e-5, rtol=1e-5)

    print("KERNEL_OK")
</pallas_src>

<mosaic_0001>
module attributes {stable_mosaic.version = 11 : i64} {
  func.func @_gram_kernel(%arg0: i32, %arg1: memref<8x256xf32, #tpu.memory_space<vmem>>, %arg2: memref<8x8xf32, #tpu.memory_space<vmem>>) attributes {dimension_semantics = [#tpu.dimension_semantics<arbitrary>], iteration_bounds = array<i64: 1>, scalar_prefetch = 0 : i64, scratch_operands = 0 : i64, tpu.core_type = #tpu.core_type<tc>, window_params = [{transform_indices = @transform_0, window_bounds = array<i64: 8, 256>}, {pipeline_mode = #tpu.pipeline_mode<synchronous>, transform_indices = @transform_1, window_bounds = array<i64: 8, 8>}]} {
    %c0_i32 = arith.constant 0 : i32
    %0 = arith.cmpi eq, %arg0, %c0_i32 : i32
    %1 = arith.extui %0 : i1 to i32
    %c0_i32_0 = arith.constant 0 : i32
    %2 = arith.cmpi ne, %1, %c0_i32_0 : i32
    scf.if %2 {
      %cst_8 = arith.constant 0.000000e+00 : f32
      %11 = vector.broadcast %cst_8 : f32 to vector<8x8xf32>
      %c0_9 = arith.constant 0 : index
      %c0_10 = arith.constant 0 : index
      %12 = vector.load %arg2[%c0_9, %c0_10] : memref<8x8xf32, #tpu.memory_space<vmem>>, vector<8x8xf32>
      tpu.vector_store %arg2[%c0_9, %c0_10], %11 {strides = array<i32>} : memref<8x8xf32, #tpu.memory_space<vmem>>, vector<8x8xf32>,
    } else {
    }
    %c0 = arith.constant 0 : index
    %c0_1 = arith.constant 0 : index
    %3 = vector.load %arg2[%c0, %c0_1] : memref<8x8xf32, #tpu.memory_space<vmem>>, vector<8x8xf32>
    %c0_2 = arith.constant 0 : index
    %c0_3 = arith.constant 0 : index
    %4 = vector.load %arg1[%c0_2, %c0_3] : memref<8x256xf32, #tpu.memory_space<vmem>>, vector<8x256xf32>
    %cst = arith.constant dense<0.000000e+00> : vector<8x8xf32>
    %5 = tpu.matmul %4, %4, %cst {dimension_numbers = #tpu.dot_dimension_numbers<[1], [1], [0], [0], [0, 0, 1, 0], [], []>} : vector<8x256xf32>, vector<8x256xf32>, vector<8x8xf32> -> vector<8x8xf32>
    %6 = arith.addf %3, %5 : vector<8x8xf32>
    %c0_4 = arith.constant 0 : index
    %c0_5 = arith.constant 0 : index
    %7 = vector.load %arg2[%c0_4, %c0_5] : memref<8x8xf32, #tpu.memory_space<vmem>>, vector<8x8xf32>
    tpu.vector_store %arg2[%c0_4, %c0_5], %6 {strides = array<i32>} : memref<8x8xf32, #tpu.memory_space<vmem>>, vector<8x8xf32>,
    %c0_i32_6 = arith.constant 0 : i32
    %8 = arith.cmpi eq, %arg0, %c0_i32_6 : i32
    %9 = arith.extui %8 : i1 to i32
    %c0_i32_7 = arith.constant 0 : i32
    %10 = arith.cmpi ne, %9, %c0_i32_7 : i32
    scf.if %10 {
      %c0_8 = arith.constant 0 : index
      %c0_9 = arith.constant 0 : index
      %11 = vector.load %arg2[%c0_8, %c0_9] : memref<8x8xf32, #tpu.memory_space<vmem>>, vector<8x8xf32>
      %cst_10 = arith.constant 4.8828125E-4 : f32
      %12 = vector.broadcast %cst_10 : f32 to vector<8x8xf32>
      %13 = arith.mulf %11, %12 : vector<8x8xf32>
      %c0_11 = arith.constant 0 : index
      %c0_12 = arith.constant 0 : index
      %14 = vector.load %arg2[%c0_11, %c0_12] : memref<8x8xf32, #tpu.memory_space<vmem>>, vector<8x8xf32>
      tpu.vector_store %arg2[%c0_11, %c0_12], %13 {strides = array<i32>} : memref<8x8xf32, #tpu.memory_space<vmem>>, vector<8x8xf32>,
    } else {
    }
    return
  }
  func.func @transform_0(%arg0: i32) -> (i32, i32) {
    %c0_i32 = arith.constant 0 : i32
    %c0_i32_0 = arith.constant 0 : i32
    return %c0_i32, %arg0 : i32, i32
  }
  func.func @transform_1(%arg0: i32) -> (i32, i32) {
    %c0_i32 = arith.constant 0 : i32
    %c0_i32_0 = arith.constant 0 : i32
    %c0_i32_1 = arith.constant 0 : i32
    return %c0_i32, %c0_i32_0 : i32, i32
  }
}

</mosaic_0001>

<bundles_post_ra>
// kernel: tpu_custom_call.1
= control target key start
LH: loop header
LB: loop body
LE: loop exit
PB: predicated region body
PF: predicated region fallthrough
CT: control target
= control target key end

     0   :  { %6 = vsyncpa [#allocation3], 0  ;;  %s175_s0 = inlined_call_operand.hbm [shape: f32[8,256], index: 0, kind: input, shape index: {}]   ;;  %s176_s1 = inlined_call_operand.hbm [shape: f32[8,8], index: 1, kind: output, shape index: {}]  }
   0x1   :  { %7 = vsyncpa [#allocation4], 0  ;;  %s13_s8 = sshll.u32 %s175_s0, 4  ;;  %s153_s9 = smov [#allocation2]   ;;  %s14_s8 = int_to_ptr.hbm [resolvable:$true] %s13_s8 }
   0x2   :  { %s15_s10 = sshll.u32 %s153_s9, 4  ;;  %s16_s10 = int_to_ptr.vmem [resolvable:$true] %s15_s10 }
   0x3   :  { %18 = dma.hbm_to_vmem [thread:$0]  %s14_s8, 256, %s16_s10, [#allocation3]  }
   0x4   :  { %149 = dma.done.wait [#allocation3], 256  }
   0x5   :  { %150 = vsyncadd [#allocation3], 4294967040  ;;  %v30_v0 = vld [vmem:[#allocation2] sm:$0xff]  ;;  %v31_v1 = vld [vmem:[#allocation2 + $0x8] sm:$0xff]  ;;  %vm27_vm0 = vcmask 64512   ;;  %v154_v2 = vmov 0.0  }
   0x6   :  { %47 = vmatpush.xpose.msra.mxu0 %v30_v0  ;;  %67 = vmatpush.xpose.msra.mxu1 %v31_v1  ;;  %28 = vst.msk [vmem:[#allocation5] sm:$0xff] %vm27_vm0, %v154_v2  ;;  %s155_s0 = smov [#allocation5]   ;;  %s88_s14 = sshll.u32 %s176_s1, 4  ;;  %s89_s14 = int_to_ptr.hbm [resolvable:$true] %s88_s14 }
   0x7   :  { %s86_s11 = sshll.u32 %s155_s0, 4  ;;  %s87_s11 = int_to_ptr.vmem [resolvable:$true] %s86_s11 }
   0x9   :  { %48 = vmatmul.f32.vlgmr.msra.gmra.mxu0 %v30_v0  ;;  %68 = vmatmul.f32.vlgmr.msra.gmra.mxu1 %v31_v1 }
   0xd   :  { %v29_v4 = vld [vmem:[#allocation5] sm:$0xff] }
  0x86   :  { %v49_v3 = vpop.f32.mrf.mxu0  ;;  %v69_v5 = vpop.f32.mrf.mxu1 }
  0x87   :  { %v70_v6 = vadd.f32 %v69_v5, %v49_v3 }
  0x89   :  { %v72_v7 = vadd.f32 %v70_v6, %v29_v4 }
  0x8b   :  { %74 = vst.msk [vmem:[#allocation5] sm:$0xff] %vm27_vm0, %v72_v7 }
  0x92   :  { %v78_v8 = vld [vmem:[#allocation5] sm:$0xff] }
  0x93   :  { %v79_v9 = vmul.f32 0.00048828125, %v78_v8 }
  0x95   :  { %80 = vst.msk [vmem:[#allocation5] sm:$0xff] %vm27_vm0, %v79_v9 }
  0x96   :  { %91 = dma.vmem_to_hbm [thread:$0]  %s87_s11, 128, %s89_s14, [#allocation4]  }
  0x97   :  { %151 = dma.done.wait [#allocation4], 128  }
  0x98   :  { %152 = vsyncadd [#allocation4], 4294967168 }
  0x99   :  { %96 = vsyncpa [#allocation3], 1 }
  0x9a   :  { %97 = vsyncpa [#allocation4], 1 }

</bundles_post_ra>
